<compile_context>
chip_gen: v7x
topology: tpu7x:2x2x1
jax: 0.10.0
libtpu: 0.0.40
codegen_flags: <defaults>
</compile_context>

<pallas_src>
import functools
import math

import jax
import jax.numpy as jnp
from jax.experimental import pallas as pl
from jax.experimental.pallas import tpu as pltpu


# ----------------------------------------------------------------------------
# Buffer setup (deterministic, mirrors nn.Module.__init__)
# ----------------------------------------------------------------------------
def make_positional_encoding(d_model: int, max_len: int = 5000) -> jnp.ndarray:
    position = jnp.arange(max_len, dtype=jnp.float32)[:, None]            # (L, 1)
    div_term = jnp.exp(
        jnp.arange(0, d_model, 2, dtype=jnp.float32) * (-math.log(10000.0) / d_model)
    )                                                                     # (D/2,)
    pe = jnp.zeros((max_len, 1, d_model), dtype=jnp.float32)
    pe = pe.at[:, 0, 0::2].set(jnp.sin(position * div_term))
    pe = pe.at[:, 0, 1::2].set(jnp.cos(position * div_term))
    return pe


# ----------------------------------------------------------------------------
# Pallas kernels
# ----------------------------------------------------------------------------
def _pe_add_kernel(x_ref, pe_ref, o_ref):
    # eval-mode forward: x + pe[:S]   (dropout is identity at inference)
    y = x_ref[...].astype(jnp.float32) + pe_ref[...]       # pe broadcasts over batch
    o_ref[...] = y.astype(o_ref.dtype)


def _splitmix32(x):
    # splitmix32-style mixer; pure VPU integer ops (works on TPU and interpret).
    x = x ^ (x >> 16)
    x = x * jnp.uint32(0x7FEB352D)
    x = x ^ (x >> 15)
    x = x * jnp.uint32(0x846CA68B)
    x = x ^ (x >> 16)
    return x


def _pe_add_dropout_kernel(x_ref, pe_ref, o_ref, *, p_drop, seed):
    # training-mode forward: dropout(x + pe[:S]) with inverted scaling 1/(1-p).
    # TODO(synk): RNG stream differs from torch's nn.Dropout; semantics
    # (Bernoulli keep mask with prob 1-p, scale 1/(1-p)) are reproduced exactly.
    ts, b, d = x_ref.shape
    y = x_ref[...].astype(jnp.float32) + pe_ref[...]

    # Global element index -> unique hash input per element, independent of the
    # tile size, so every grid block gets a distinct dropout mask.
    s_i = jax.lax.broadcasted_iota(jnp.int32, (ts, b, d), 0).astype(jnp.uint32)
    b_i = jax.lax.broadcasted_iota(jnp.int32, (ts, b, d), 1).astype(jnp.uint32)
    d_i = jax.lax.broadcasted_iota(jnp.int32, (ts, b, d), 2).astype(jnp.uint32)
    blk = pl.program_id(0).astype(jnp.uint32)
    lin = (blk * jnp.uint32(ts) + s_i) * jnp.uint32(b * d) + b_i * jnp.uint32(d) + d_i

    bits = _splitmix32(lin + jnp.uint32(seed & 0xFFFFFFFF) * jnp.uint32(0x9E3779B9))
    # Integer-threshold compare (full 32-bit granularity, no int->float cast).
    thresh = jnp.uint32(min(int(p_drop * 4294967296.0), 4294967295))
    keep = bits >= thresh
    scale = jnp.float32(1.0 / (1.0 - p_drop))
    o_ref[...] = jnp.where(keep, y * scale, 0.0).astype(o_ref.dtype)


# ----------------------------------------------------------------------------
# Wrapper
# ----------------------------------------------------------------------------
def _choose_seq_tile(S, B, D, itemsize, target_bytes=2 * 1024 * 1024):
    # ~2 MiB blocks: fits comfortably in v7x's 32 MiB scoped VMEM even with
    # 2 inputs + 1 output double-buffered, and keeps the HBM pipe saturated.
    rows = max(1, target_bytes // max(1, B * D * itemsize))
    rows = int(min(S, rows))
    if rows >= 8:
        rows -= rows % 8          # keep sublane alignment when possible
    return rows


def positional_encoding_forward(
    x: jnp.ndarray,
    pe: jnp.ndarray,
    *,
    dropout_p: float = 0.1,
    training: bool = False,
    seed: int = 0,
) -> jnp.ndarray:
    """x: (S, B, D); pe: (max_len, 1, D) float32.  Output dtype == x dtype."""
    S, B, D = x.shape
    max_len = pe.shape[0]
    assert S <= max_len

    TS = _choose_seq_tile(S, B, D, jnp.dtype(x.dtype).itemsize)
    grid = (pl.cdiv(S, TS),)

    # TODO(synk): for very small B with D not a multiple of 128, a flattened
    # (S*B, D) view would give denser sublane/lane stores; kept 3-D here so the
    # pe table is not re-materialized B times in HBM.
    x_spec = pl.BlockSpec((TS, B, D), lambda s: (s, 0, 0))
    pe_spec = pl.BlockSpec((TS, 1, D), lambda s: (s, 0, 0))   # full pe passed; rows selected here
    out_shape = jax.ShapeDtypeStruct((S, B, D), x.dtype)
    cparams = pltpu.CompilerParams(dimension_semantics=("parallel",))

    if (not training) or dropout_p == 0.0:
        kernel = _pe_add_kernel
    else:
        # TODO(synk): seed is baked in at trace time; a runtime seed would need
        # an SMEM scalar input, kept static here for portability.
        kernel = functools.partial(
            _pe_add_dropout_kernel, p_drop=float(dropout_p), seed=int(seed)
        )

    return pl.pallas_call(
        kernel,
        out_shape=out_shape,
        grid=grid,
        in_specs=[x_spec, pe_spec],
        out_specs=x_spec,
        compiler_params=cparams,
    )(x, pe)


# ----------------------------------------------------------------------------
# Demo / self-check
# ----------------------------------------------------------------------------
if __name__ == "__main__":
    d_model = 32
    seq_len = 8
    batch = 2
    max_len = 64   # small max_len for the demo (module default is 5000)

    key = jax.random.PRNGKey(0)
    x = jax.random.normal(key, (seq_len, batch, d_model), dtype=jnp.float32)
    pe = make_positional_encoding(d_model, max_len=max_len)

    # eval-mode forward (dropout = identity): must match pure-JAX reference
    y_eval = positional_encoding_forward(x, pe, dropout_p=0.1, training=False)
    y_eval = jax.block_until_ready(y_eval)
    ref = x + pe[:seq_len]
    assert y_eval.shape == (seq_len, batch, d_model)
    assert jnp.allclose(y_eval, ref, atol=1e-6, rtol=1e-6)

    # training-mode forward (dropout active inside the kernel)
    p = 0.1
    y_train = positional_encoding_forward(
        x, pe, dropout_p=p, training=True, seed=1234
    )
    y_train = jax.block_until_ready(y_train)
    assert y_train.shape == (seq_len, batch, d_model)
    # every surviving element equals ref / (1-p); dropped elements are exactly 0
    scaled = ref / (1.0 - p)
    ok = jnp.logical_or(
        jnp.isclose(y_train, 0.0, atol=1e-6),
        jnp.isclose(y_train, scaled, atol=1e-5, rtol=1e-5),
    )
    assert bool(jnp.all(ok))
    n_zero = int(jnp.sum(y_train == 0.0))
    assert 0 < n_zero < y_train.size // 2   # some, but not too many, dropped

    print("KERNEL_OK")
</pallas_src>

<mosaic_0001>
module attributes {stable_mosaic.version = 11 : i64} {
  func.func @_pe_add_kernel(%arg0: i32, %arg1: memref<8x2x32xf32, #tpu.memory_space<vmem>>, %arg2: memref<8x1x32xf32, #tpu.memory_space<vmem>>, %arg3: memref<8x2x32xf32, #tpu.memory_space<vmem>>) attributes {dimension_semantics = [#tpu.dimension_semantics<parallel>], iteration_bounds = array<i64: 1>, scalar_prefetch = 0 : i64, scratch_operands = 0 : i64, tpu.core_type = #tpu.core_type<tc>, window_params = [{transform_indices = @transform_0, window_bounds = array<i64: 8, 2, 32>}, {transform_indices = @transform_1, window_bounds = array<i64: 8, 1, 32>}, {transform_indices = @transform_2, window_bounds = array<i64: 8, 2, 32>}]} {
    %c0 = arith.constant 0 : index
    %c0_0 = arith.constant 0 : index
    %c0_1 = arith.constant 0 : index
    %0 = vector.load %arg1[%c0, %c0_0, %c0_1] : memref<8x2x32xf32, #tpu.memory_space<vmem>>, vector<8x2x32xf32>
    %c0_2 = arith.constant 0 : index
    %c0_3 = arith.constant 0 : index
    %c0_4 = arith.constant 0 : index
    %1 = vector.load %arg2[%c0_2, %c0_3, %c0_4] : memref<8x1x32xf32, #tpu.memory_space<vmem>>, vector<8x1x32xf32>
    %2 = vector.broadcast %1 : vector<8x1x32xf32> to vector<8x2x32xf32>
    %3 = arith.addf %0, %2 : vector<8x2x32xf32>
    %c0_5 = arith.constant 0 : index
    %c0_6 = arith.constant 0 : index
    %c0_7 = arith.constant 0 : index
    %4 = vector.load %arg3[%c0_5, %c0_6, %c0_7] : memref<8x2x32xf32, #tpu.memory_space<vmem>>, vector<8x2x32xf32>
    tpu.vector_store %arg3[%c0_5, %c0_6, %c0_7], %3 {strides = array<i32>} : memref<8x2x32xf32, #tpu.memory_space<vmem>>, vector<8x2x32xf32>,
    return
  }
  func.func @transform_0(%arg0: i32) -> (i32, i32, i32) {
    %c0_i32 = arith.constant 0 : i32
    %c0_i32_0 = arith.constant 0 : i32
    %c0_i32_1 = arith.constant 0 : i32
    return %arg0, %c0_i32, %c0_i32_0 : i32, i32, i32
  }
  func.func @transform_1(%arg0: i32) -> (i32, i32, i32) {
    %c0_i32 = arith.constant 0 : i32
    %c0_i32_0 = arith.constant 0 : i32
    %c0_i32_1 = arith.constant 0 : i32
    return %arg0, %c0_i32, %c0_i32_0 : i32, i32, i32
  }
  func.func @transform_2(%arg0: i32) -> (i32, i32, i32) {
    %c0_i32 = arith.constant 0 : i32
    %c0_i32_0 = arith.constant 0 : i32
    %c0_i32_1 = arith.constant 0 : i32
    return %arg0, %c0_i32, %c0_i32_0 : i32, i32, i32
  }
}

</mosaic_0001>

<bundles_post_ra>
// kernel: tpu_custom_call.1
= control target key start
LH: loop header
LB: loop body
LE: loop exit
PB: predicated region body
PF: predicated region fallthrough
CT: control target
= control target key end

     0   :  { %vm84_vm0 = vcmask 254976   ;;  %s230_s0 = inlined_call_operand.vmem [shape: f32[8,2,32], index: 0, kind: input, shape index: {}]   ;;  %s231_s1 = inlined_call_operand.vmem [shape: f32[64,1,32], index: 1, kind: input, shape index: {}]   ;;  %s232_s2 = inlined_call_operand.hbm [shape: f32[8,2,32], index: 2, kind: output, shape index: {}]  }
   0x1   :  { %v12_v0 = vld [vmem:[%s230_s0] sm:$0x3]  ;;  %v13_v3 = vld [vmem:[%s230_s0 + $0x2] sm:$0x3]  ;;  %v14_v5 = vld [vmem:[%s230_s0 + $0x4] sm:$0x3] }
   0x2   :  { %v109_v1 = vld [vmem:[%s231_s1] ss:$0 sm:$0xff]  ;;  %v110_v4 = vld [vmem:[%s231_s1 + $0x1] ss:$0 sm:$0xff]  ;;  %v111_v7 = vld [vmem:[%s231_s1 + $0x2] ss:$0 sm:$0xff] }
   0x3   :  { %v76_v2 = vadd.f32 %v109_v1, %v12_v0  ;;  %v77_v6 = vadd.f32 %v110_v4, %v13_v3  ;;  %v15_v8 = vld [vmem:[%s230_s0 + $0x6] sm:$0x3]  ;;  %v112_v9 = vld [vmem:[%s231_s1 + $0x3] ss:$0 sm:$0xff]  ;;  %v78_v10 = vadd.f32 %v111_v7, %v14_v5  ;;  %v16_v12 = vld [vmem:[%s230_s0 + $0x8] sm:$0x3] }
   0x4   :  { %v79_v11 = vadd.f32 %v112_v9, %v15_v8  ;;  %v113_v13 = vld [vmem:[%s231_s1 + $0x4] ss:$0 sm:$0xff]  ;;  %v17_v14 = vld [vmem:[%s230_s0 + $0xa] sm:$0x3]  ;;  %v114_v16 = vld [vmem:[%s231_s1 + $0x5] ss:$0 sm:$0xff] }
   0x5   :  { %85 = vst.msk [vmem:[#allocation2] sm:$0x3] %vm84_vm0, %v76_v2  ;;  %86 = vst.msk [vmem:[#allocation2 + $0x2] sm:$0x3] %vm84_vm0, %v77_v6  ;;  %v80_v15 = vadd.f32 %v113_v13, %v16_v12  ;;  %v18_v17 = vld [vmem:[%s230_s0 + $0xc] sm:$0x3]  ;;  %v81_v19 = vadd.f32 %v114_v16, %v17_v14 }
   0x6   :  { %v115_v18 = vld [vmem:[%s231_s1 + $0x6] ss:$0 sm:$0xff]  ;;  %87 = vst.msk [vmem:[#allocation2 + $0x4] sm:$0x3] %vm84_vm0, %v78_v10  ;;  %88 = vst.msk [vmem:[#allocation2 + $0x6] sm:$0x3] %vm84_vm0, %v79_v11 }
   0x7   :  { %v82_v20 = vadd.f32 %v115_v18, %v18_v17  ;;  %v19_v21 = vld [vmem:[%s230_s0 + $0xe] sm:$0x3]  ;;  %v116_v22 = vld [vmem:[%s231_s1 + $0x7] ss:$0 sm:$0xff] }
   0x8   :  { %7 = vsyncpa [#allocation3], 0  ;;  %89 = vst.msk [vmem:[#allocation2 + $0x8] sm:$0x3] %vm84_vm0, %v80_v15  ;;  %v83_v23 = vadd.f32 %v116_v22, %v19_v21  ;;  %s144_s13 = smov [#allocation2]  }
   0x9   :  { %s98_s14 = sshll.u32 %s144_s13, 4  ;;  %90 = vst.msk [vmem:[#allocation2 + $0xa] sm:$0x3] %vm84_vm0, %v81_v19  ;;  %91 = vst.msk [vmem:[#allocation2 + $0xc] sm:$0x3] %vm84_vm0, %v82_v20  ;;  %s99_s14 = int_to_ptr.vmem [resolvable:$true] %s98_s14 }
   0xa   :  { %92 = vst.msk [vmem:[#allocation2 + $0xe] sm:$0x3] %vm84_vm0, %v83_v23  ;;  %s120_s15 = scalar_lea.vmem %s99_s14, 256  ;;  %p125_p1 = scmp.lt.s32.totalorder %s99_s14, %s99_s14 }
   0xb   :  { %p121_p0 = scmp.ne.s32.totalorder %s99_s14, %s120_s15  ;;  %p126_p2 = scmp.lt.s32.totalorder %s120_s15, %s120_s15 }
   0xd   :  { %p127_p3 = por %p126_p2, %p125_p1 }
   0xf   :  { %p128_p4 = pnand %p127_p3, %p121_p0 }
  0x11   :  { %131 = shalt.err (!%p128_p4)
}
  0x12   :  { %s132_s16 = scalar_lea.hbm %s232_s2, 256 }
  0x13   :  { %p133_p5 = scmp.ne.s32.totalorder %s232_s2, %s132_s16  ;;  %p136_p6 = scmp.lt.u32.totalorder %s132_s16, %s232_s2 }
  0x15   :  { %p138_p7 = pnand %p136_p6, %p133_p5 }
  0x17   :  { %141 = shalt.err (!%p138_p7)
}
  0x18   :  { %s145_s21 = smov 32   ;;  %s146_s22 = smov 2  }
  0x19   :  { %104 = dma.vmem_to_hbm [thread:$0]  %s99_s14, 256, %s232_s2, [#allocation3], %s145_s21, %s145_s21, %s146_s22  }
  0x1a   :  { %142 = dma.done.wait [#allocation3], 256  }
  0x1b   :  { %143 = vsyncadd [#allocation3], 4294967040 }
  0x1c   :  { %108 = vsyncpa [#allocation3], 1 }

</bundles_post_ra>
